<compile_context>
chip_gen: v7x
topology: tpu7x:2x2x1
jax: 0.10.0
libtpu: 0.0.40
codegen_flags: <defaults>
</compile_context>

<pallas_src>
import jax
import jax.numpy as jnp
from jax.experimental import pallas as pl
from jax.experimental.pallas import tpu as pltpu

IN_FEATURES = 28 * 28   # 784
HIDDEN = 128
LANE = 128              # TPU lane width; pad class dim to a multiple of this
DEFAULT_BLOCK_B = 512   # batch-tile rows for large batches (multiple of 128)


def _round_up(n: int, m: int) -> int:
    return ((n + m - 1) // m) * m


def _mlp_kernel(x_ref, w1_ref, b1_ref, w2_ref, b2_ref, o_ref):
    # x_ref:  (TB, 784)     w1_ref: (784, 128)    b1_ref: (1, 128)
    # w2_ref: (128, C_pad)  b2_ref: (1, C_pad)    o_ref:  (TB, C_pad)
    x = x_ref[...]
    h = jnp.dot(x, w1_ref[...], preferred_element_type=jnp.float32) + b1_ref[...]
    logits = jnp.dot(h, w2_ref[...], preferred_element_type=jnp.float32) + b2_ref[...]
    o_ref[...] = logits.astype(o_ref.dtype)


def linear_fashion_mnist_forward(x, w1, b1, w2, b2, *, block_b: int = DEFAULT_BLOCK_B):
    """x: (B, 1, 28, 28) float32 (NCHW). Returns logits (B, num_classes)."""
    B = x.shape[0]
    num_classes = w2.shape[1]
    x_flat = x.reshape(B, IN_FEATURES)  # nn.Flatten semantics (row-major)

    # --- lane-dense output: pad class dim to a multiple of 128 ---------------
    c_pad = _round_up(num_classes, LANE)
    if c_pad != num_classes:
        w2 = jnp.pad(w2, ((0, 0), (0, c_pad - num_classes)))
        b2 = jnp.pad(b2, ((0, 0), (0, c_pad - num_classes)))

    # --- batch tiling ---------------------------------------------------------
    # Small batches: one grid step sized to the (8-aligned) batch.
    # Large batches: 512-row tiles, batch zero-padded up to a tile multiple.
    tb = min(block_b, _round_up(B, 8))
    b_pad = _round_up(B, tb)
    if b_pad != B:
        x_flat = jnp.pad(x_flat, ((0, b_pad - B), (0, 0)))
    grid = (b_pad // tb,)

    out = pl.pallas_call(
        _mlp_kernel,
        out_shape=jax.ShapeDtypeStruct((b_pad, c_pad), jnp.float32),
        grid_spec=pltpu.PrefetchScalarGridSpec(
            num_scalar_prefetch=0,
            grid=grid,
            in_specs=[
                # x: one batch tile per grid step (pipelined HBM->VMEM DMA)
                pl.BlockSpec((tb, IN_FEATURES), lambda i: (i, 0)),
                # weights / biases: constant index_map -> stay VMEM-resident
                pl.BlockSpec((IN_FEATURES, HIDDEN), lambda i: (0, 0)),
                pl.BlockSpec((1, HIDDEN), lambda i: (0, 0)),
                pl.BlockSpec((HIDDEN, c_pad), lambda i: (0, 0)),
                pl.BlockSpec((1, c_pad), lambda i: (0, 0)),
            ],
            out_specs=pl.BlockSpec((tb, c_pad), lambda i: (i, 0)),
        ),
        compiler_params=pltpu.CompilerParams(
            # Batch tiles are independent: lets v7x shard across its 2 TCs.
            dimension_semantics=("parallel",),
        ),
    )(x_flat, w1, b1, w2, b2)

    # Drop batch padding and the lane-padding of the class dimension.
    return out[:B, :num_classes]


def init_params(key, num_classes):
    """Deterministic init matching PyTorch nn.Linear default:
    U(-1/sqrt(fan_in), 1/sqrt(fan_in)) for weight and bias."""
    k1, k2, k3, k4 = jax.random.split(key, 4)
    bound1 = 1.0 / jnp.sqrt(float(IN_FEATURES))
    bound2 = 1.0 / jnp.sqrt(float(HIDDEN))
    w1 = jax.random.uniform(k1, (IN_FEATURES, HIDDEN), jnp.float32, -bound1, bound1)
    b1 = jax.random.uniform(k2, (1, HIDDEN), jnp.float32, -bound1, bound1)
    w2 = jax.random.uniform(k3, (HIDDEN, num_classes), jnp.float32, -bound2, bound2)
    b2 = jax.random.uniform(k4, (1, num_classes), jnp.float32, -bound2, bound2)
    return w1, b1, w2, b2


def _reference(x, w1, b1, w2, b2):
    h = x.reshape(x.shape[0], IN_FEATURES) @ w1 + b1
    return h @ w2 + b2


if __name__ == "__main__":
    num_classes = 10

    key = jax.random.PRNGKey(0)
    kx, kx2, kp = jax.random.split(key, 3)
    w1, b1, w2, b2 = init_params(kp, num_classes)

    # Small smoke test (single grid step).
    batch = 8
    x = jax.random.normal(kx, (batch, 1, 28, 28), jnp.float32)  # NCHW like PyTorch
    logits = linear_fashion_mnist_forward(x, w1, b1, w2, b2)
    jax.block_until_ready(logits)
    ref = _reference(x, w1, b1, w2, b2)
    assert logits.shape == (batch, num_classes)
    assert jnp.allclose(logits, ref, atol=1e-4, rtol=1e-4)

    # Multi-tile path: ragged batch + small tile to exercise grid + padding.
    batch2 = 300
    x2 = jax.random.normal(kx2, (batch2, 1, 28, 28), jnp.float32)
    logits2 = linear_fashion_mnist_forward(x2, w1, b1, w2, b2, block_b=128)
    jax.block_until_ready(logits2)
    ref2 = _reference(x2, w1, b1, w2, b2)
    assert logits2.shape == (batch2, num_classes)
    assert jnp.allclose(logits2, ref2, atol=1e-4, rtol=1e-4)

    print("KERNEL_OK")
</pallas_src>

<mosaic_0001>
module attributes {stable_mosaic.version = 11 : i64} {
  func.func @_mlp_kernel(%arg0: i32, %arg1: memref<8x784xf32, #tpu.memory_space<vmem>>, %arg2: memref<784x128xf32, #tpu.memory_space<vmem>>, %arg3: memref<1x128xf32, #tpu.memory_space<vmem>>, %arg4: memref<128x128xf32, #tpu.memory_space<vmem>>, %arg5: memref<1x128xf32, #tpu.memory_space<vmem>>, %arg6: memref<8x128xf32, #tpu.memory_space<vmem>>) attributes {dimension_semantics = [#tpu.dimension_semantics<parallel>], iteration_bounds = array<i64: 1>, scalar_prefetch = 0 : i64, scratch_operands = 0 : i64, tpu.core_type = #tpu.core_type<tc>, window_params = [{transform_indices = @transform_0, window_bounds = array<i64: 8, 784>}, {pipeline_mode = #tpu.pipeline_mode<synchronous>, transform_indices = @transform_1, window_bounds = array<i64: 784, 128>}, {pipeline_mode = #tpu.pipeline_mode<synchronous>, transform_indices = @transform_2, window_bounds = array<i64: 1, 128>}, {pipeline_mode = #tpu.pipeline_mode<synchronous>, transform_indices = @transform_3, window_bounds = array<i64: 128, 128>}, {pipeline_mode = #tpu.pipeline_mode<synchronous>, transform_indices = @transform_4, window_bounds = array<i64: 1, 128>}, {transform_indices = @transform_5, window_bounds = array<i64: 8, 128>}]} {
    %c0 = arith.constant 0 : index
    %c0_0 = arith.constant 0 : index
    %0 = vector.load %arg1[%c0, %c0_0] : memref<8x784xf32, #tpu.memory_space<vmem>>, vector<8x784xf32>
    %c0_1 = arith.constant 0 : index
    %c0_2 = arith.constant 0 : index
    %1 = vector.load %arg2[%c0_1, %c0_2] : memref<784x128xf32, #tpu.memory_space<vmem>>, vector<784x128xf32>
    %cst = arith.constant dense<0.000000e+00> : vector<8x128xf32>
    %2 = tpu.matmul %0, %1, %cst {dimension_numbers = #tpu.dot_dimension_numbers<[1], [0], [0], [1], [0, 0, 1, 1], [], []>} : vector<8x784xf32>, vector<784x128xf32>, vector<8x128xf32> -> vector<8x128xf32>
    %c0_3 = arith.constant 0 : index
    %c0_4 = arith.constant 0 : index
    %3 = vector.load %arg3[%c0_3, %c0_4] : memref<1x128xf32, #tpu.memory_space<vmem>>, vector<1x128xf32>
    %4 = vector.broadcast %3 : vector<1x128xf32> to vector<8x128xf32>
    %5 = arith.addf %2, %4 : vector<8x128xf32>
    %c0_5 = arith.constant 0 : index
    %c0_6 = arith.constant 0 : index
    %6 = vector.load %arg4[%c0_5, %c0_6] : memref<128x128xf32, #tpu.memory_space<vmem>>, vector<128x128xf32>
    %cst_7 = arith.constant dense<0.000000e+00> : vector<8x128xf32>
    %7 = tpu.matmul %5, %6, %cst_7 {dimension_numbers = #tpu.dot_dimension_numbers<[1], [0], [0], [1], [0, 0, 1, 1], [], []>} : vector<8x128xf32>, vector<128x128xf32>, vector<8x128xf32> -> vector<8x128xf32>
    %c0_8 = arith.constant 0 : index
    %c0_9 = arith.constant 0 : index
    %8 = vector.load %arg5[%c0_8, %c0_9] : memref<1x128xf32, #tpu.memory_space<vmem>>, vector<1x128xf32>
    %9 = vector.broadcast %8 : vector<1x128xf32> to vector<8x128xf32>
    %10 = arith.addf %7, %9 : vector<8x128xf32>
    %c0_10 = arith.constant 0 : index
    %c0_11 = arith.constant 0 : index
    %11 = vector.load %arg6[%c0_10, %c0_11] : memref<8x128xf32, #tpu.memory_space<vmem>>, vector<8x128xf32>
    tpu.vector_store %arg6[%c0_10, %c0_11], %10 {strides = array<i32>} : memref<8x128xf32, #tpu.memory_space<vmem>>, vector<8x128xf32>,
    return
  }
  func.func @transform_0(%arg0: i32) -> (i32, i32) {
    %c0_i32 = arith.constant 0 : i32
    %c0_i32_0 = arith.constant 0 : i32
    return %arg0, %c0_i32 : i32, i32
  }
  func.func @transform_1(%arg0: i32) -> (i32, i32) {
    %c0_i32 = arith.constant 0 : i32
    %c0_i32_0 = arith.constant 0 : i32
    %c0_i32_1 = arith.constant 0 : i32
    return %c0_i32, %c0_i32_0 : i32, i32
  }
  func.func @transform_2(%arg0: i32) -> (i32, i32) {
    %c0_i32 = arith.constant 0 : i32
    %c0_i32_0 = arith.constant 0 : i32
    %c0_i32_1 = arith.constant 0 : i32
    return %c0_i32, %c0_i32_0 : i32, i32
  }
  func.func @transform_3(%arg0: i32) -> (i32, i32) {
    %c0_i32 = arith.constant 0 : i32
    %c0_i32_0 = arith.constant 0 : i32
    %c0_i32_1 = arith.constant 0 : i32
    return %c0_i32, %c0_i32_0 : i32, i32
  }
  func.func @transform_4(%arg0: i32) -> (i32, i32) {
    %c0_i32 = arith.constant 0 : i32
    %c0_i32_0 = arith.constant 0 : i32
    %c0_i32_1 = arith.constant 0 : i32
    return %c0_i32, %c0_i32_0 : i32, i32
  }
  func.func @transform_5(%arg0: i32) -> (i32, i32) {
    %c0_i32 = arith.constant 0 : i32
    %c0_i32_0 = arith.constant 0 : i32
    return %arg0, %c0_i32 : i32, i32
  }
}

</mosaic_0001>

<bundles_post_ra>
// kernel: tpu_custom_call.1
= control target key start
LH: loop header
LB: loop body
LE: loop exit
PB: predicated region body
PF: predicated region fallthrough
CT: control target
= control target key end

     0   :  { %10 = vsyncpa [#allocation3], 0  ;;  %s1070_s0 = inlined_call_operand.hbm [shape: f32[8,784], index: 0, kind: input, shape index: {}]   ;;  %s1071_s1 = inlined_call_operand.hbm [shape: f32[784,128], index: 1, kind: input, shape index: {}]   ;;  %s1072_s2 = inlined_call_operand.vmem [shape: f32[1,128], index: 2, kind: input, shape index: {}]   ;;  %s1073_s3 = inlined_call_operand.hbm [shape: f32[128,128], index: 3, kind: input, shape index: {}]   ;;  %s1074_s4 = inlined_call_operand.vmem [shape: f32[1,128], index: 4, kind: input, shape index: {}]   ;;  %s1075_s5 = inlined_call_operand.hbm [shape: f32[8,128], index: 5, kind: output, shape index: {}]  }
   0x1   :  { %11 = vsyncpa [#allocation6], 0 }
   0x2   :  { %12 = vsyncpa [#allocation4], 0  ;;  %s962_s18 = smov [#allocation5]   ;;  %s868_s22 = scalar_lea.hbm %s1071_s1, 12544 }
   0x3   :  { %s28_s19 = sshll.u32 %s962_s18, 4  ;;  %p869_p0 = scmp.ne.s32.totalorder %s1071_s1, %s868_s22  ;;  %s29_s19 = int_to_ptr.vmem [resolvable:$true] %s28_s19 }
   0x4   :  { %p872_p1 = scmp.lt.u32.totalorder %s868_s22, %s1071_s1 }
   0x6   :  { %p874_p2 = pnand %p872_p1, %p869_p0 }
   0x8   :  { %877 = shalt.err (!%p874_p2)
}
   0x9   :  { %s878_s27 = scalar_lea.vmem %s29_s19, 12544  ;;  %p883_p4 = scmp.lt.s32.totalorder %s29_s19, %s29_s19 }
   0xa   :  { %p879_p3 = scmp.ne.s32.totalorder %s29_s19, %s878_s27  ;;  %p884_p5 = scmp.lt.s32.totalorder %s878_s27, %s878_s27 }
   0xc   :  { %p885_p6 = por %p884_p5, %p883_p4 }
   0xe   :  { %p886_p7 = pnand %p885_p6, %p879_p3 }
  0x10   :  { %889 = shalt.err (!%p886_p7)
}
  0x11   :  { %s963_s28 = smov 128   ;;  %s964_s29 = smov 8  }
  0x12   :  { %34 = dma.hbm_to_vmem [thread:$0]  %s1071_s1, 12544, %s29_s19, [#allocation6], %s963_s28, %s963_s28, %s964_s29  }
  0x13   :  { %s965_s7 = smov [#allocation2]   ;;  %s966_s9 = smov [#allocation7]  }
  0x14   :  { %s19_s8 = sshll.u32 %s965_s7, 4  ;;  %s42_s10 = sshll.u32 %s966_s9, 4  ;;  %s20_s8 = int_to_ptr.vmem [resolvable:$true] %s19_s8  ;;  %s43_s10 = int_to_ptr.vmem [resolvable:$true] %s42_s10 }
  0x15   :  { %s890_s13 = scalar_lea.hbm %s1070_s0, 896 }
  0x16   :  { %p891_p8 = scmp.ne.s32.totalorder %s1070_s0, %s890_s13  ;;  %p894_p9 = scmp.lt.u32.totalorder %s890_s13, %s1070_s0 }
  0x18   :  { %p896_p10 = pnand %p894_p9, %p891_p8 }
  0x1a   :  { %899 = shalt.err (!%p896_p10)
}
  0x1b   :  { %s900_s1 = scalar_lea.vmem %s20_s8, 896  ;;  %p905_p12 = scmp.lt.s32.totalorder %s20_s8, %s20_s8 }
  0x1c   :  { %p901_p11 = scmp.ne.s32.totalorder %s20_s8, %s900_s1  ;;  %p906_p13 = scmp.lt.s32.totalorder %s900_s1, %s900_s1 }
  0x1e   :  { %p907_p0 = por %p906_p13, %p905_p12 }
  0x20   :  { %p908_p1 = pnand %p907_p0, %p901_p11 }
  0x22   :  { %911 = shalt.err (!%p908_p1)
}
  0x23   :  { %22 = dma.hbm_to_vmem [thread:$0]  %s1070_s0, 896, %s20_s8, [#allocation3]  }
  0x24   :  { %s912_s22 = scalar_lea.hbm %s1073_s3, 2048 }
  0x25   :  { %p913_p2 = scmp.ne.s32.totalorder %s1073_s3, %s912_s22  ;;  %p916_p3 = scmp.lt.u32.totalorder %s912_s22, %s1073_s3 }
  0x27   :  { %p918_p4 = pnand %p916_p3, %p913_p2 }
  0x29   :  { %921 = shalt.err (!%p918_p4)
}
  0x2a   :  { %s922_s27 = scalar_lea.vmem %s43_s10, 2048  ;;  %p927_p6 = scmp.lt.s32.totalorder %s43_s10, %s43_s10 }
  0x2b   :  { %p923_p5 = scmp.ne.s32.totalorder %s43_s10, %s922_s27  ;;  %p928_p7 = scmp.lt.s32.totalorder %s922_s27, %s922_s27 }
  0x2d   :  { %p929_p8 = por %p928_p7, %p927_p6 }
  0x2f   :  { %p930_p9 = pnand %p929_p8, %p923_p5 }
  0x31   :  { %933 = shalt.err (!%p930_p9)
}
  0x32   :  { %48 = dma.hbm_to_vmem [thread:$0]  %s1073_s3, 2048, %s43_s10, [#allocation6], %s963_s28, %s963_s28, %s964_s29  }
  0x33   :  { %956 = dma.done.wait [#allocation3], 896  }
  0x34   :  { %957 = vsyncadd [#allocation3], 4294966400 }
  0x35   :  { %958 = dma.done.wait [#allocation6], 14592  }
  0x36   :  { %959 = vsyncadd [#allocation6], 4294952704  ;;  %v83_v0 = vld [vmem:[#allocation5 + $0x80] sm:$0xff]  ;;  %v84_v1 = vld [vmem:[#allocation5 + $0x88] sm:$0xff]  ;;  %vm968_vm0 = vmmov 0   ;;  %vm172_vm1 = vcmask 130048  }
  0x37   :  { %v67_v2 = vld [vmem:[#allocation5] sm:$0xff]  ;;  %v736_v3 = vpack.c.bf16 %v84_v1, %v83_v0  ;;  %v68_v4 = vld [vmem:[#allocation5 + $0x8] sm:$0xff]  ;;  %v85_v11 = vld [vmem:[#allocation5 + $0x90] sm:$0xff] }
  0x38   :  { %v115_v5 = vld [vmem:[#allocation5 + $0x180] sm:$0xff]  ;;  %v116_v6 = vld [vmem:[#allocation5 + $0x188] sm:$0xff]  ;;  %v738_v7 = vpack.c.bf16 %v68_v4, %v67_v2  ;;  %v86_v13 = vld [vmem:[#allocation5 + $0x98] sm:$0xff] }
  0x39   :  { %v768_v8 = vpack.c.bf16 %v116_v6, %v115_v5  ;;  %v99_v9 = vld [vmem:[#allocation5 + $0x100] sm:$0xff]  ;;  %v100_v10 = vld [vmem:[#allocation5 + $0x108] sm:$0xff]  ;;  %737 = vmatprep.subr.bf16.mxu0 %v736_v3  ;;  %v69_v14 = vld [vmem:[#allocation5 + $0x10] sm:$0xff]  ;;  %v740_v16 = vpack.c.bf16 %v86_v13, %v85_v11 }
  0x3a   :  { %v770_v12 = vpack.c.bf16 %v100_v10, %v99_v9  ;;  %v70_v15 = vld [vmem:[#allocation5 + $0x18] sm:$0xff]  ;;  %739 = vmatpush3.bf16.msra.mxu0 %v738_v7  ;;  %v117_v18 = vld [vmem:[#allocation5 + $0x190] sm:$0xff]  ;;  %v87_v23 = vld [vmem:[#allocation5 + $0xa0] sm:$0xff] }
  0x3b   :  { %769 = vmatprep.subr.bf16.mxu1 %v768_v8  ;;  %v742_v17 = vpack.c.bf16 %v70_v15, %v69_v14  ;;  %v118_v19 = vld [vmem:[#allocation5 + $0x198] sm:$0xff]  ;;  %v101_v20 = vld [vmem:[#allocation5 + $0x110] sm:$0xff]  ;;  %v88_v24 = vld [vmem:[#allocation5 + $0xa8] sm:$0xff]  ;;  %741 = vmatprep.subr.bf16.mxu0 %v740_v16 }
  0x3c   :  { %771 = vmatpush3.bf16.msra.mxu1 %v770_v12  ;;  %v772_v21 = vpack.c.bf16 %v118_v19, %v117_v18  ;;  %v102_v22 = vld [vmem:[#allocation5 + $0x118] sm:$0xff]  ;;  %v744_v26 = vpack.c.bf16 %v88_v24, %v87_v23  ;;  %v71_v27 = vld [vmem:[#allocation5 + $0x20] sm:$0xff]  ;;  %v72_v28 = vld [vmem:[#allocation5 + $0x28] sm:$0xff] }
  0x3d   :  { %v774_v25 = vpack.c.bf16 %v102_v22, %v101_v20  ;;  %v119_v29 = vld [vmem:[#allocation5 + $0x1a0] sm:$0xff]  ;;  %v120_v30 = vld [vmem:[#allocation5 + $0x1a8] sm:$0xff]  ;;  %v746_v33 = vpack.c.bf16 %v72_v28, %v71_v27  ;;  %v89_v35 = vld [vmem:[#allocation5 + $0xb0] sm:$0xff] }
  0x3e   :  { %773 = vmatprep.subr.bf16.mxu1 %v772_v21  ;;  %v103_v31 = vld [vmem:[#allocation5 + $0x120] sm:$0xff]  ;;  %v104_v32 = vld [vmem:[#allocation5 + $0x128] sm:$0xff]  ;;  %743 = vmatpush3.bf16.msra.mxu0 %v742_v17  ;;  %v776_v34 = vpack.c.bf16 %v120_v30, %v119_v29  ;;  %v90_v36 = vld [vmem:[#allocation5 + $0xb8] sm:$0xff] }
  0x3f   :  { %v73_v37 = vld [vmem:[#allocation5 + $0x30] sm:$0xff]  ;;  %745 = vmatprep.subr.bf16.mxu0 %v744_v26  ;;  %v778_v38 = vpack.c.bf16 %v104_v32, %v103_v31  ;;  %v748_v39 = vpack.c.bf16 %v90_v36, %v89_v35  ;;  %v74_v40 = vld [vmem:[#allocation5 + $0x38] sm:$0xff]  ;;  %v91_v46 = vld [vmem:[#allocation5 + $0xc0] sm:$0xff] }
  0x40   :  { %775 = vmatpush3.bf16.msra.mxu1 %v774_v25  ;;  %v121_v41 = vld [vmem:[#allocation5 + $0x1b0] sm:$0xff]  ;;  %v122_v42 = vld [vmem:[#allocation5 + $0x1b8] sm:$0xff]  ;;  %v92_v47 = vld [vmem:[#allocation5 + $0xc8] sm:$0xff]  ;;  %v750_v48 = vpack.c.bf16 %v74_v40, %v73_v37 }
  0x41   :  { %777 = vmatprep.subr.bf16.mxu1 %v776_v34  ;;  %v780_v43 = vpack.c.bf16 %v122_v42, %v121_v41  ;;  %v105_v44 = vld [vmem:[#allocation5 + $0x130] sm:$0xff]  ;;  %v106_v45 = vld [vmem:[#allocation5 + $0x138] sm:$0xff]  ;;  %v123_v49 = vld [vmem:[#allocation5 + $0x1c0] sm:$0xff]  ;;  %v752_v52 = vpack.c.bf16 %v92_v47, %v91_v46 }
  0x42   :  { %747 = vmatpush3.bf16.msra.mxu0 %v746_v33  ;;  %v124_v50 = vld [vmem:[#allocation5 + $0x1c8] sm:$0xff]  ;;  %v782_v51 = vpack.c.bf16 %v106_v45, %v105_v44  ;;  %v75_v53 = vld [vmem:[#allocation5 + $0x40] sm:$0xff]  ;;  %v93_v58 = vld [vmem:[#allocation5 + $0xd0] sm:$0xff] }
  0x43   :  { %749 = vmatprep.subr.bf16.mxu0 %v748_v39  ;;  %v76_v54 = vld [vmem:[#allocation5 + $0x48] sm:$0xff]  ;;  %v107_v55 = vld [vmem:[#allocation5 + $0x140] sm:$0xff]  ;;  %v784_v56 = vpack.c.bf16 %v124_v50, %v123_v49  ;;  %v94_v59 = vld [vmem:[#allocation5 + $0xd8] sm:$0xff]  ;;  %v967_v50 = vmov 0.0|0.0  }
  0x44   :  { %779 = vmatpush3.bf16.msra.mxu1 %v778_v38  ;;  %v108_v57 = vld [vmem:[#allocation5 + $0x148] sm:$0xff]  ;;  %v125_v60 = vld [vmem:[#allocation5 + $0x1d0] sm:$0xff]  ;;  %v126_v61 = vld [vmem:[#allocation5 + $0x1d8] sm:$0xff]  ;;  %v754_v62 = vpack.c.bf16 %v76_v54, %v75_v53  ;;  %v756_v0 = vpack.c.bf16 %v94_v59, %v93_v58 }
  0x45   :  { %781 = vmatprep.subr.bf16.mxu1 %v780_v43  ;;  %v786_v63 = vpack.c.bf16 %v108_v57, %v107_v55  ;;  %v77_v1 = vld [vmem:[#allocation5 + $0x50] sm:$0xff]  ;;  %v78_v2 = vld [vmem:[#allocation5 + $0x58] sm:$0xff]  ;;  %v788_v4 = vpack.c.bf16 %v126_v61, %v125_v60  ;;  %v95_v6 = vld [vmem:[#allocation5 + $0xe0] sm:$0xff]  ;;  %v969_v60 = vmov 0.0  }
  0x46   :  { %751 = vmatpush3.bf16.msra.mxu0 %v750_v48  ;;  %v109_v3 = vld [vmem:[#allocation5 + $0x150] sm:$0xff]  ;;  %v110_v5 = vld [vmem:[#allocation5 + $0x158] sm:$0xff]  ;;  %v96_v7 = vld [vmem:[#allocation5 + $0xe8] sm:$0xff]  ;;  %v758_v10 = vpack.c.bf16 %v78_v2, %v77_v1 }
  0x47   :  { %753 = vmatprep.subr.bf16.mxu0 %v752_v52  ;;  %v127_v8 = vld [vmem:[#allocation5 + $0x1e0] sm:$0xff]  ;;  %v128_v9 = vld [vmem:[#allocation5 + $0x1e8] sm:$0xff]  ;;  %v61_v12 = vld [vmem:[#allocation2 + $0x8] sm:$0xff]  ;;  %v790_v13 = vpack.c.bf16 %v110_v5, %v109_v3  ;;  %v760_v14 = vpack.c.bf16 %v96_v7, %v95_v6 }
  0x48   :  { %783 = vmatpush3.bf16.msra.mxu1 %v782_v51  ;;  %v79_v11 = vld [vmem:[#allocation5 + $0x60] sm:$0xff]  ;;  %v80_v15 = vld [vmem:[#allocation5 + $0x68] sm:$0xff]  ;;  %v792_v18 = vpack.c.bf16 %v128_v9, %v127_v8  ;;  %v97_v19 = vld [vmem:[#allocation5 + $0xf0] sm:$0xff]  ;;  %240 = vmatprep.mubr.f32.mxu0 %v61_v12 }
  0x49   :  { %785 = vmatprep.subr.bf16.mxu1 %v784_v56  ;;  %v111_v16 = vld [vmem:[#allocation5 + $0x160] sm:$0xff]  ;;  %v112_v17 = vld [vmem:[#allocation5 + $0x168] sm:$0xff]  ;;  %v98_v20 = vld [vmem:[#allocation5 + $0xf8] sm:$0xff]  ;;  %v762_v24 = vpack.c.bf16 %v80_v15, %v79_v11 }
  0x4a   :  { %755 = vmatpush3.bf16.msra.mxu0 %v754_v62  ;;  %v63_v21 = vld [vmem:[#allocation2 + $0x18] sm:$0xff]  ;;  %v129_v22 = vld [vmem:[#allocation5 + $0x1f0] sm:$0xff]  ;;  %v130_v23 = vld [vmem:[#allocation5 + $0x1f8] sm:$0xff]  ;;  %v794_v25 = vpack.c.bf16 %v112_v17, %v111_v16  ;;  %v764_v26 = vpack.c.bf16 %v98_v20, %v97_v19 }
  0x4b   :  { %757 = vmatprep.subr.bf16.mxu0 %v756_v0  ;;  %310 = vmatprep.mubr.f32.mxu1 %v63_v21  ;;  %v81_v27 = vld [vmem:[#allocation5 + $0x70] sm:$0xff]  ;;  %v82_v28 = vld [vmem:[#allocation5 + $0x78] sm:$0xff]  ;;  %v796_v30 = vpack.c.bf16 %v130_v23, %v129_v22  ;;  %v147_v32 = vld [vmem:[#allocation5 + $0x280] sm:$0xff] }
  0x4c   :  { %787 = vmatpush3.bf16.msra.mxu1 %v786_v63  ;;  %v113_v29 = vld [vmem:[#allocation5 + $0x170] sm:$0xff]  ;;  %v114_v31 = vld [vmem:[#allocation5 + $0x178] sm:$0xff]  ;;  %v148_v33 = vld [vmem:[#allocation5 + $0x288] sm:$0xff]  ;;  %v766_v34 = vpack.c.bf16 %v82_v28, %v81_v27 }
  0x4d   :  { %789 = vmatprep.subr.bf16.mxu1 %v788_v4  ;;  %v798_v35 = vpack.c.bf16 %v114_v31, %v113_v29  ;;  %v800_v36 = vpack.c.bf16 %v148_v33, %v147_v32  ;;  %v131_v37 = vld [vmem:[#allocation5 + $0x200] sm:$0xff]  ;;  %v132_v38 = vld [vmem:[#allocation5 + $0x208] sm:$0xff]  ;;  %v149_v39 = vld [vmem:[#allocation5 + $0x290] sm:$0xff] }
  0x4e   :  { %759 = vmatpush3.bf16.msra.mxu0 %v758_v10  ;;  %v150_v40 = vld [vmem:[#allocation5 + $0x298] sm:$0xff]  ;;  %v60_v41 = vld [vmem:[#allocation2] sm:$0xff]  ;;  %v802_v42 = vpack.c.bf16 %v132_v38, %v131_v37  ;;  %v133_v44 = vld [vmem:[#allocation5 + $0x210] sm:$0xff] }
  0x4f   :  { %761 = vmatprep.subr.bf16.mxu0 %v760_v14  ;;  %v62_v43 = vld [vmem:[#allocation2 + $0x10] sm:$0xff]  ;;  %v804_v45 = vpack.c.bf16 %v150_v40, %v149_v39  ;;  %v151_v47 = vld [vmem:[#allocation5 + $0x2a0] sm:$0xff]  ;;  %v152_v48 = vld [vmem:[#allocation5 + $0x2a8] sm:$0xff] }
  0x50   :  { %791 = vmatpush3.bf16.msra.mxu1 %v790_v13  ;;  %v134_v46 = vld [vmem:[#allocation5 + $0x218] sm:$0xff]  ;;  %v65_v49 = vld [vmem:[#allocation2 + $0x28] sm:$0xff]  ;;  %v163_v51 = vld [vmem:[#allocation5 + $0x300] sm:$0xff]  ;;  %v808_v55 = vpack.c.bf16 %v152_v48, %v151_v47 }
  0x51   :  { %793 = vmatprep.subr.bf16.mxu1 %v792_v18  ;;  %v164_v52 = vld [vmem:[#allocation5 + $0x308] sm:$0xff]  ;;  %v806_v54 = vpack.c.bf16 %v134_v46, %v133_v44  ;;  %v135_v56 = vld [vmem:[#allocation5 + $0x220] sm:$0xff]  ;;  %v153_v58 = vld [vmem:[#allocation5 + $0x2b0] sm:$0xff] }
  0x52   :  { %763 = vmatpush3.bf16.msra.mxu0 %v762_v24  ;;  %v833_v53 = vpack.c.bf16 %v164_v52, %v163_v51  ;;  %v136_v57 = vld [vmem:[#allocation5 + $0x228] sm:$0xff]  ;;  %v154_v59 = vld [vmem:[#allocation5 + $0x2b8] sm:$0xff]  ;;  %v137_v0 = vld [vmem:[#allocation5 + $0x230] sm:$0xff] }
  0x53   :  { %765 = vmatprep.subr.bf16.mxu0 %v764_v26  ;;  %v66_v61 = vld [vmem:[#allocation2 + $0x30] sm:$0xff]  ;;  %v810_v62 = vpack.c.bf16 %v136_v57, %v135_v56  ;;  %v812_v63 = vpack.c.bf16 %v154_v59, %v153_v58  ;;  %v155_v2 = vld [vmem:[#allocation5 + $0x2c0] sm:$0xff]  ;;  %v156_v3 = vld [vmem:[#allocation5 + $0x2c8] sm:$0xff] }
  0x54   :  { %795 = vmatpush3.bf16.msra.mxu1 %v794_v25  ;;  %v138_v1 = vld [vmem:[#allocation5 + $0x238] sm:$0xff]  ;;  %v816_v5 = vpack.c.bf16 %v156_v3, %v155_v2  ;;  %v139_v6 = vld [vmem:[#allocation5 + $0x240] sm:$0xff]  ;;  %v140_v7 = vld [vmem:[#allocation5 + $0x248] sm:$0xff] }
  0x55   :  { %797 = vmatprep.subr.bf16.mxu1 %v796_v30  ;;  %v814_v4 = vpack.c.bf16 %v138_v1, %v137_v0  ;;  %v157_v8 = vld [vmem:[#allocation5 + $0x2d0] sm:$0xff]  ;;  %v158_v9 = vld [vmem:[#allocation5 + $0x2d8] sm:$0xff]  ;;  %v818_v10 = vpack.c.bf16 %v140_v7, %v139_v6  ;;  %v159_v14 = vld [vmem:[#allocation5 + $0x2e0] sm:$0xff] }
  0x56   :  { %767 = vmatpush3.bf16.msra.mxu0 %v766_v34  ;;  %v820_v11 = vpack.c.bf16 %v158_v9, %v157_v8  ;;  %v141_v12 = vld [vmem:[#allocation5 + $0x250] sm:$0xff]  ;;  %v142_v13 = vld [vmem:[#allocation5 + $0x258] sm:$0xff]  ;;  %v160_v15 = vld [vmem:[#allocation5 + $0x2e8] sm:$0xff] }
  0x57   :  { %801 = vmatprep.subr.bf16.mxu0 %v800_v36  ;;  %v822_v16 = vpack.c.bf16 %v142_v13, %v141_v12  ;;  %v824_v17 = vpack.c.bf16 %v160_v15, %v159_v14  ;;  %v143_v18 = vld [vmem:[#allocation5 + $0x260] sm:$0xff]  ;;  %v144_v19 = vld [vmem:[#allocation5 + $0x268] sm:$0xff]  ;;  %v161_v20 = vld [vmem:[#allocation5 + $0x2f0] sm:$0xff] }
  0x58   :  { %799 = vmatpush3.bf16.msra.mxu1 %v798_v35  ;;  %v162_v21 = vld [vmem:[#allocation5 + $0x2f8] sm:$0xff]  ;;  %v826_v22 = vpack.c.bf16 %v144_v19, %v143_v18  ;;  %v145_v24 = vld [vmem:[#allocation5 + $0x270] sm:$0xff]  ;;  %v64_v27 = vld [vmem:[#allocation2 + $0x20] sm:$0xff] }
  0x59   :  { %832 = vmatprep.subr.bf16.mxu1 %v967_v50  ;;  %241 = vmatmul.mubr.f32.vlgmr.msra.gmra.mrb[0].mxu0 %v60_v41  ;;  %v828_v23 = vpack.c.bf16 %v162_v21, %v161_v20  ;;  %v146_v25 = vld [vmem:[#allocation5 + $0x278] sm:$0xff]  ;;  %v456_v28 = vld [vmem:[#allocation7] sm:$0xff]  ;;  %v458_v30 = vld [vmem:[#allocation7 + $0x10] sm:$0xff] }
  0x5a   :  { %803 = vmatpush3.bf16.msra.mxu0 %v802_v42  ;;  %380 = vmatprep.mubr.f32.mxu0 %v65_v49  ;;  %v830_v26 = vpack.c.bf16 %v146_v25, %v145_v24  ;;  %v457_v29 = vld [vmem:[#allocation7 + $0x8] sm:$0xff]  ;;  %v459_v32 = vld [vmem:[#allocation7 + $0x18] sm:$0xff]  ;;  %v460_v34 = vld [vmem:[#allocation7 + $0x20] sm:$0xff] }
  0x5b   :  { %311 = vmatmul.mubr.f32.vlgmr.msra.gmra.mrb[0].mxu1 %v62_v43  ;;  %805 = vmatprep.subr.bf16.mxu0 %v804_v45  ;;  %v836_v31 = vpack.c.bf16 %v457_v29, %v456_v28  ;;  %v839_v33 = vpack.c.bf16 %v459_v32, %v458_v30  ;;  %v461_v35 = vld [vmem:[#allocation7 + $0x28] sm:$0xff]  ;;  %v462_v37 = vld [vmem:[#allocation7 + $0x30] sm:$0xff]  ;;  %v463_v38 = vld [vmem:[#allocation7 + $0x38] sm:$0xff] }
  0x5c   :  { %834 = vmatpush3.bf16.msra.mxu1 %v833_v53  ;;  %698 = vmatprep.mubr.msk.f32.mxu1 %vm968_vm0, %v969_v60  ;;  %v842_v36 = vpack.c.bf16 %v461_v35, %v460_v34  ;;  %v845_v39 = vpack.c.bf16 %v463_v38, %v462_v37  ;;  %v464_v40 = vld [vmem:[#allocation7 + $0x40] sm:$0xff]  ;;  %v465_v41 = vld [vmem:[#allocation7 + $0x48] sm:$0xff]  ;;  %v466_v43 = vld [vmem:[#allocation7 + $0x50] sm:$0xff] }
  0x5d   :  { %835 = vmatprep.subr.bf16.mxu1 %v967_v50  ;;  %v848_v42 = vpack.c.bf16 %v465_v41, %v464_v40  ;;  %v467_v44 = vld [vmem:[#allocation7 + $0x58] sm:$0xff]  ;;  %v468_v46 = vld [vmem:[#allocation7 + $0x60] sm:$0xff]  ;;  %v469_v47 = vld [vmem:[#allocation7 + $0x68] sm:$0xff] }
  0x5e   :  { %807 = vmatpush3.bf16.msra.mxu0 %v806_v54  ;;  %v851_v45 = vpack.c.bf16 %v467_v44, %v466_v43  ;;  %v854_v48 = vpack.c.bf16 %v469_v47, %v468_v46  ;;  %v470_v49 = vld [vmem:[#allocation7 + $0x70] sm:$0xff]  ;;  %v471_v51 = vld [vmem:[#allocation7 + $0x78] sm:$0xff] }
  0x5f   :  { %809 = vmatprep.subr.bf16.mxu0 %v808_v55  ;;  %699 = vmatmul.mubr.msk.f32.vlgmr.msra.gmra.mrb[2].mxu1 %vm172_vm1, %v66_v61  ;;  %v857_v52 = vpack.c.bf16 %v471_v51, %v470_v49  ;;  %v566_v54 = vld [vmem:[%s1072_s2] ss:$0 sm:$0xff]  ;;  %s970_s2 = smov [#allocation8]  }
  0x60   :  { %733 = vmatprep.mubr.msk.f32.mxu1 %vm968_vm0, %v969_v60  ;;  %837 = vmatpush3.bf16.msra.mxu1 %v836_v31  ;;  %s556_s7 = sshll.u32 %s970_s2, 4  ;;  %s557_s7 = int_to_ptr.vmem [resolvable:$true] %s556_s7 }
  0x61   :  { %838 = vmatprep.subr.bf16.mxu1 %v967_v50  ;;  %s934_s8 = scalar_lea.vmem %s557_s7, 128  ;;  %p939_p11 = scmp.lt.s32.totalorder %s557_s7, %s557_s7 }
  0x62   :  { %811 = vmatpush3.bf16.msra.mxu0 %v810_v62  ;;  %p935_p10 = scmp.ne.s32.totalorder %s557_s7, %s934_s8  ;;  %p940_p12 = scmp.lt.s32.totalorder %s934_s8, %s934_s8 }
  0x63   :  { %813 = vmatprep.subr.bf16.mxu0 %v812_v63 }
  0x64   :  { %840 = vmatpush3.bf16.msra.mxu1 %v839_v33  ;;  %p941_p13 = por %p940_p12, %p939_p11 }
  0x65   :  { %841 = vmatprep.subr.bf16.mxu1 %v967_v50 }
  0x66   :  { %815 = vmatpush3.bf16.msra.mxu0 %v814_v4  ;;  %v568_v4 = vld [vmem:[%s1074_s4] ss:$0 sm:$0xff]  ;;  %p942_p0 = pnand %p941_p13, %p935_p10 }
  0x67   :  { %817 = vmatprep.subr.bf16.mxu0 %v816_v5 }
  0x68   :  { %843 = vmatpush3.bf16.msra.mxu1 %v842_v36 }
  0x69   :  { %844 = vmatprep.subr.bf16.mxu1 %v967_v50 }
  0x6a   :  { %819 = vmatpush3.bf16.msra.mxu0 %v818_v10 }
  0x6b   :  { %821 = vmatprep.subr.bf16.mxu0 %v820_v11 }
  0x6c   :  { %846 = vmatpush3.bf16.msra.mxu1 %v845_v39 }
  0x6d   :  { %847 = vmatprep.subr.bf16.mxu1 %v967_v50 }
  0x6e   :  { %823 = vmatpush3.bf16.msra.mxu0 %v822_v16 }
  0x6f   :  { %825 = vmatprep.subr.bf16.mxu0 %v824_v17 }
  0x70   :  { %849 = vmatpush3.bf16.msra.mxu1 %v848_v42 }
  0x71   :  { %850 = vmatprep.subr.bf16.mxu1 %v967_v50 }
  0x72   :  { %827 = vmatpush3.bf16.msra.mxu0 %v826_v22 }
  0x73   :  { %829 = vmatprep.subr.bf16.mxu0 %v828_v23 }
  0x74   :  { %852 = vmatpush3.bf16.msra.mxu1 %v851_v45 }
  0x75   :  { %853 = vmatprep.subr.bf16.mxu1 %v967_v50 }
  0x76   :  { %831 = vmatpush3.bf16.msra.mxu0 %v830_v26 }
  0x78   :  { %855 = vmatpush3.bf16.msra.mxu1 %v854_v48 }
  0x79   :  { %381 = vmatmul.mubr.f32.vlgmr.msra.gmra.mrb[2].mxu0 %v64_v27  ;;  %856 = vmatprep.subr.bf16.mxu1 %v967_v50 }
  0x7c   :  { %858 = vmatpush3.bf16.msra.mxu1 %v857_v52 }
 0x12c   :  { %v601_v53 = vpop.f32.mrb[0].mxu0 }
 0x12d   :  { %v602_v55 = vpop.f32.mrb[1].mxu0 }
 0x12e   :  { %v636_v56 = vpop.f32.mrb[0].mxu1  ;;  %v603_v57 = vadd.f32 %v602_v55, %v601_v53 }
 0x12f   :  { %v637_v58 = vpop.f32.mrb[1].mxu1 }
 0x130   :  { %v638_v59 = vadd.f32 %v637_v58, %v636_v56  ;;  %v243_v60 = vadd.f32 %v603_v57, %v566_v54 }
 0x132   :  { %v313_v61 = vadd.f32 %v638_v59, %v243_v60  ;;  %v452_v62 = vpop.f32.mrb[2].mxu1 }
 0x133   :  { %v700_v63 = vpop.f32.mrb[3].mxu1 }
 0x14c   :  { %v671_v0 = vpop.f32.mrb[2].mxu0 }
 0x14d   :  { %v672_v50 = vpop.f32.mrb[3].mxu0 }
 0x14e   :  { %v673_v1 = vadd.f32 %v672_v50, %v671_v0 }
 0x150   :  { %v383_v2 = vadd.f32 %v673_v1, %v313_v61 }
 0x152   :  { %v453_v3 = vadd.f32 %v452_v62, %v383_v2 }
 0x154   :  { %734 = vmatmul.mubr.f32.vlgmr.msra.gmra.mrb[4].mxu1 %v453_v3 }
 0x227   :  { %v545_v5 = vpop.f32.mrb[4].mxu1 }
 0x228   :  { %v546_v6 = vadd.f32 %v568_v4, %v545_v5  ;;  %v735_v7 = vpop.f32.mrb[5].mxu1 }
 0x22a   :  { %549 = vst [vmem:[#allocation8] sm:$0xff] %v546_v6 }
 0x22b   :  { %945 = shalt.err (!%p942_p0)
}
 0x22c   :  { %s946_s11 = scalar_lea.hbm %s1075_s5, 128 }
 0x22d   :  { %p947_p1 = scmp.ne.s32.totalorder %s1075_s5, %s946_s11  ;;  %p950_p2 = scmp.lt.u32.totalorder %s946_s11, %s1075_s5 }
 0x22f   :  { %p952_p3 = pnand %p950_p2, %p947_p1 }
 0x231   :  { %955 = shalt.err (!%p952_p3)
}
 0x232   :  { %559 = dma.vmem_to_hbm [thread:$0]  %s557_s7, 128, %s1075_s5, [#allocation4]  }
 0x233   :  { %960 = dma.done.wait [#allocation4], 128  }
 0x234   :  { %961 = vsyncadd [#allocation4], 4294967168 }
 0x235   :  { %563 = vsyncpa [#allocation3], 1 }
 0x236   :  { %564 = vsyncpa [#allocation6], 1 }
 0x237   :  { %565 = vsyncpa [#allocation4], 1 }

</bundles_post_ra>
